<compile_context>
chip_gen: v7x
topology: tpu7x:2x2x1
jax: 0.10.0
libtpu: 0.0.40
codegen_flags: <defaults>
</compile_context>

<pallas_src>
import functools

import jax
import jax.numpy as jnp
from jax.experimental import pallas as pl
from jax.experimental.pallas import tpu as pltpu

N_EDGE_TYPE = 7
ENC_CH = [32, 64, 128, 256]
DEC_CH = [256, 128, 64, 32]
ENC_BLK = [3, 3, 3, 3]
DEC_BLK = [3, 3, 3, 3]
N_NODE_TYPE = 5
MID_CH = 32
BN_EPS = 1e-5

TILE_M = 256          # M tile for the tiled path (production: ~2-4K on v7x)
MAX_HEAD_ROWS = 1024  # fused two-matmul head kernel up to this many rows


def _rnd(x, m):
  return ((x + m - 1) // m) * m


def _k_tiling(k):
  """Padded contraction size and K tile: one block up to 512, else 256-tiles."""
  kp = _rnd(k, 128)
  if kp <= 512:
    return kp, kp
  kp = _rnd(k, 256)
  return kp, 256


def _pad_rows(a, rows):
  if a.shape[0] == rows:
    return a
  if a.shape[0] > rows:
    return a[:rows]
  return jnp.pad(a, ((0, rows - a.shape[0]),) + ((0, 0),) * (a.ndim - 1))


# ---------------------------------------------------------------------------
# Kernel bodies
# ---------------------------------------------------------------------------
def _pool_or_load(x_ref, pool8):
  """Load the x tile; optionally fuse the 8->1 child mean pooling."""
  xv = x_ref[...]
  if pool8:
    r8, kk = xv.shape
    xv = (xv.astype(jnp.float32).reshape(r8 // 8, 8, kk).sum(axis=1)
          * 0.125).astype(jnp.bfloat16)
  return xv


def _fused_small_kernel(nk, m_true, inv_n, eps, use_bn, use_res, act, pool8,
                        mask, *refs):
  """Single-M-tile fused matmul + BN + residual + ReLU (+ pad-row mask)."""
  x_ref, w_ref, g_ref, b_ref = refs[0], refs[1], refs[2], refs[3]
  idx = 4
  r_ref = None
  if use_res:
    r_ref = refs[idx]
    idx += 1
  o_ref = refs[idx]
  idx += 1
  acc_ref = refs[idx] if nk > 1 else None

  def epilogue(acc):
    if use_bn:
      # NOTE: batch statistics (training-mode BN); single-pass var with clamp.
      s1 = jnp.sum(acc, axis=0, keepdims=True)
      s2 = jnp.sum(acc * acc, axis=0, keepdims=True)
      mean = s1 * inv_n
      var = jnp.maximum(s2 * inv_n - mean * mean, 0.0)
      y = (acc - mean) * (jax.lax.rsqrt(var + eps) * g_ref[...]) + b_ref[...]
    else:
      y = acc + b_ref[...]
    if use_res:
      y = y + r_ref[...].astype(jnp.float32)
    if act:
      y = jnp.maximum(y, 0.0)
    if mask:
      rows = jax.lax.broadcasted_iota(jnp.int32, y.shape, 0)
      y = jnp.where(rows < m_true, y, 0.0)
    return y.astype(o_ref.dtype)

  if nk == 1:
    acc = jnp.dot(_pool_or_load(x_ref, pool8), w_ref[...],
                  preferred_element_type=jnp.float32)
    o_ref[...] = epilogue(acc)
  else:
    ki = pl.program_id(0)

    @pl.when(ki == 0)
    def _():
      acc_ref[...] = jnp.zeros_like(acc_ref)

    acc_ref[...] += jnp.dot(_pool_or_load(x_ref, pool8), w_ref[...],
                            preferred_element_type=jnp.float32)

    @pl.when(ki == nk - 1)
    def _():
      o_ref[...] = epilogue(acc_ref[...])


def _mm_stats_kernel(nk, pool8, *refs):
  """Tiled pass 1: matmul (f32) + per-M-tile column sum / sum-of-squares."""
  if nk > 1:
    x_ref, w_ref, y_ref, st_ref, acc_ref = refs
  else:
    x_ref, w_ref, y_ref, st_ref = refs
    acc_ref = None

  def finalize(acc):
    y_ref[...] = acc
    s1 = jnp.sum(acc, axis=0, keepdims=True)
    s2 = jnp.sum(acc * acc, axis=0, keepdims=True)
    st_ref[...] = jnp.concatenate(
        [s1, s2, jnp.zeros((6, acc.shape[1]), jnp.float32)], axis=0)

  if nk == 1:
    finalize(jnp.dot(_pool_or_load(x_ref, pool8), w_ref[...],
                     preferred_element_type=jnp.float32))
  else:
    ki = pl.program_id(1)

    @pl.when(ki == 0)
    def _():
      acc_ref[...] = jnp.zeros_like(acc_ref)

    acc_ref[...] += jnp.dot(_pool_or_load(x_ref, pool8), w_ref[...],
                            preferred_element_type=jnp.float32)

    @pl.when(ki == nk - 1)
    def _():
      finalize(acc_ref[...])


def _finalize_kernel(tm, m_true, use_res, act, mask, *refs):
  """Tiled pass 2: y*scale + shift (+residual) (+ReLU), pad mask, bf16 out."""
  if use_res:
    y_ref, sc_ref, sh_ref, r_ref, o_ref = refs
  else:
    y_ref, sc_ref, sh_ref, o_ref = refs
    r_ref = None
  y = y_ref[...] * sc_ref[...] + sh_ref[...]
  if use_res:
    y = y + r_ref[...].astype(jnp.float32)
  if act:
    y = jnp.maximum(y, 0.0)
  if mask:
    rows = (jax.lax.broadcasted_iota(jnp.int32, y.shape, 0)
            + pl.program_id(0) * tm)
    y = jnp.where(rows < m_true, y, 0.0)
  o_ref[...] = y.astype(o_ref.dtype)


def _head_kernel(m_true, inv_n, eps, mask, x_ref, w1_ref, g1_ref, b1_ref,
                 w2_ref, b2_ref, o_ref):
  """Fused merged prediction head: conv1+BN+ReLU then conv2+bias, lane-dense."""
  acc1 = jnp.dot(x_ref[...], w1_ref[...], preferred_element_type=jnp.float32)
  s1 = jnp.sum(acc1, axis=0, keepdims=True)
  s2 = jnp.sum(acc1 * acc1, axis=0, keepdims=True)
  mean = s1 * inv_n
  var = jnp.maximum(s2 * inv_n - mean * mean, 0.0)
  h = jnp.maximum(
      (acc1 - mean) * (jax.lax.rsqrt(var + eps) * g1_ref[...]) + b1_ref[...],
      0.0)
  out = jnp.dot(h.astype(jnp.bfloat16), w2_ref[...],
                preferred_element_type=jnp.float32) + b2_ref[...]
  if mask:
    rows = jax.lax.broadcasted_iota(jnp.int32, out.shape, 0)
    out = jnp.where(rows < m_true, out, 0.0)
  o_ref[...] = out.astype(o_ref.dtype)


# ---------------------------------------------------------------------------
# Fused-linear wrappers
# ---------------------------------------------------------------------------
def _fused_small_call(x, m_true, w, g2, b2, residual, act, use_bn, pool8, eps):
  rows_in, k = x.shape
  _, n = w.shape
  xr = 8 if pool8 else 1
  mp = rows_in // xr
  tk, nk = (k, 1) if k <= 512 else (256, k // 256)
  use_res = residual is not None

  inputs = [x, w, g2, b2]
  in_specs = [
      pl.BlockSpec((xr * mp, tk), lambda ki: (0, ki)),
      pl.BlockSpec((tk, n), lambda ki: (ki, 0)),
      pl.BlockSpec((1, n), lambda ki: (0, 0)),
      pl.BlockSpec((1, n), lambda ki: (0, 0)),
  ]
  if use_res:
    inputs.append(residual)
    in_specs.append(pl.BlockSpec((mp, n), lambda ki: (0, 0)))
  scratch = [pltpu.VMEM((mp, n), jnp.float32)] if nk > 1 else []

  kernel = functools.partial(_fused_small_kernel, nk, m_true, 1.0 / m_true,
                             eps, use_bn, use_res, act, pool8, m_true < mp)
  return pl.pallas_call(
      kernel,
      out_shape=jax.ShapeDtypeStruct((mp, n), jnp.bfloat16),
      grid_spec=pltpu.PrefetchScalarGridSpec(
          num_scalar_prefetch=0,
          grid=(nk,),
          in_specs=in_specs,
          out_specs=pl.BlockSpec((mp, n), lambda ki: (0, 0)),
          scratch_shapes=scratch),
      compiler_params=pltpu.CompilerParams(
          dimension_semantics=("arbitrary",)),
  )(*inputs)


def _fused_tiled_call(x, m_true, w, g2, b2, residual, act, use_bn, pool8, eps):
  rows_in, k = x.shape
  _, n = w.shape
  xr = 8 if pool8 else 1
  mp = rows_in // xr
  mp_t = _rnd(mp, TILE_M)
  if mp_t != mp:
    x = jnp.pad(x, ((0, xr * (mp_t - mp)), (0, 0)))
    if residual is not None:
      residual = jnp.pad(residual, ((0, mp_t - mp), (0, 0)))
  nm = mp_t // TILE_M
  tk, nk = (k, 1) if k <= 512 else (256, k // 256)
  use_res = residual is not None

  # Pass 1: matmul + per-M-tile stats.  M axis parallel (v7x 2 TCs), K arbitrary.
  scratch = [pltpu.VMEM((TILE_M, n), jnp.float32)] if nk > 1 else []
  y_raw, st = pl.pallas_call(
      functools.partial(_mm_stats_kernel, nk, pool8),
      out_shape=(jax.ShapeDtypeStruct((mp_t, n), jnp.float32),
                 jax.ShapeDtypeStruct((nm * 8, n), jnp.float32)),
      grid_spec=pltpu.PrefetchScalarGridSpec(
          num_scalar_prefetch=0,
          grid=(nm, nk),
          in_specs=[
              pl.BlockSpec((xr * TILE_M, tk), lambda mi, ki: (mi, ki)),
              pl.BlockSpec((tk, n), lambda mi, ki: (ki, 0)),
          ],
          out_specs=(pl.BlockSpec((TILE_M, n), lambda mi, ki: (mi, 0)),
                     pl.BlockSpec((8, n), lambda mi, ki: (mi, 0))),
          scratch_shapes=scratch),
      compiler_params=pltpu.CompilerParams(
          dimension_semantics=("parallel", "arbitrary")),
  )(x, w)

  # Tiny O(n) reduction of per-tile stats -> BN scale/shift (stays in XLA).
  st = st.reshape(nm, 8, n).sum(axis=0)
  if use_bn:
    mean = st[0] / m_true
    var = jnp.maximum(st[1] / m_true - mean * mean, 0.0)
    scale = (g2[0] * jax.lax.rsqrt(var + eps)).reshape(1, n)
    shift = (b2[0] - mean * scale[0]).reshape(1, n)
  else:
    scale = jnp.ones((1, n), jnp.float32)
    shift = b2

  # Pass 2: normalize + residual + ReLU + pad-row mask, bf16 out.
  inputs2 = [y_raw, scale, shift]
  in_specs2 = [
      pl.BlockSpec((TILE_M, n), lambda mi: (mi, 0)),
      pl.BlockSpec((1, n), lambda mi: (0, 0)),
      pl.BlockSpec((1, n), lambda mi: (0, 0)),
  ]
  if use_res:
    inputs2.append(residual)
    in_specs2.append(pl.BlockSpec((TILE_M, n), lambda mi: (mi, 0)))
  out = pl.pallas_call(
      functools.partial(_finalize_kernel, TILE_M, m_true, use_res, act,
                        m_true < mp_t),
      out_shape=jax.ShapeDtypeStruct((mp_t, n), jnp.bfloat16),
      grid_spec=pltpu.PrefetchScalarGridSpec(
          num_scalar_prefetch=0,
          grid=(nm,),
          in_specs=in_specs2,
          out_specs=pl.BlockSpec((TILE_M, n), lambda mi: (mi, 0))),
      compiler_params=pltpu.CompilerParams(
          dimension_semantics=("parallel",)),
  )(*inputs2)
  return out[:mp] if mp_t != mp else out


def fused_linear(x, m_true, w, gamma, beta, *, residual=None, act=True,
                 use_bn=True, pool8=False, eps=BN_EPS):
  """Fused matmul + BN(+residual)(+ReLU) -> padded bf16 activation."""
  rows_in, k = x.shape
  kw, n = w.shape
  assert k == kw, (k, kw)
  xr = 8 if pool8 else 1
  mp = rows_in // xr
  g2 = jnp.asarray(gamma, jnp.float32).reshape(1, n)
  b2 = jnp.asarray(beta, jnp.float32).reshape(1, n)
  x = x.astype(jnp.bfloat16)
  if residual is not None:
    residual = residual.astype(jnp.bfloat16)
  if mp <= TILE_M:
    return _fused_small_call(x, m_true, w, g2, b2, residual, act, use_bn,
                             pool8, eps)
  return _fused_tiled_call(x, m_true, w, g2, b2, residual, act, use_bn,
                           pool8, eps)


# ---------------------------------------------------------------------------
# Parameter construction (deterministic, no checkpoint).
# ---------------------------------------------------------------------------
class KeyGen:

  def __init__(self, seed):
    self.key = jax.random.PRNGKey(seed)

  def __call__(self):
    self.key, k = jax.random.split(self.key)
    return k


def _weight(key, shape):
  return (shape[0] ** -0.5) * jax.random.normal(key, shape, jnp.float32)


def _pad_weight_k(w):
  k, n = w.shape
  kp, _ = _k_tiling(k)
  if kp != k:
    w = jnp.pad(w, ((0, kp - k), (0, 0)))
  return w.astype(jnp.bfloat16)


def make_gcna(kg, cin, cout, n_node_type):
  node_ch = n_node_type if n_node_type > 1 else 0
  w = _weight(kg(), (N_EDGE_TYPE * (cin + node_ch), cout))
  return {'w': _pad_weight_k(w),
          'n_node_type': n_node_type,
          'gamma': jnp.ones((cout,), jnp.float32),
          'beta': jnp.zeros((cout,), jnp.float32)}


def make_resblock(kg, c, n_node_type):
  return {'b1': make_gcna(kg, c, c, n_node_type),
          'b2': make_gcna(kg, c, c, n_node_type)}


def make_conv1x1(kg, cin, cout):
  # K equals the stored activation width (multiple of 8) -> no K padding,
  # so previous-layer activations feed in without re-padding copies.
  return {'w': _weight(kg(), (cin, cout)).astype(jnp.bfloat16),
          'gamma': jnp.ones((cout,), jnp.float32),
          'beta': jnp.zeros((cout,), jnp.float32)}


def make_head(kg, cin, mid):
  # predict (cin->mid->2) and regress (cin->mid->4) merged side-by-side and
  # padded to 128 lanes (lane-dense stores); conv2 is block-diagonal so the
  # two heads stay mathematically independent.
  wp1, wr1 = _weight(kg(), (cin, mid)), _weight(kg(), (cin, mid))
  wp2, wr2 = _weight(kg(), (mid, 2)), _weight(kg(), (mid, 4))
  w1 = jnp.zeros((cin, 128), jnp.float32)
  w1 = w1.at[:, :mid].set(wp1).at[:, mid:2 * mid].set(wr1)
  w2 = jnp.zeros((128, 128), jnp.float32)
  w2 = w2.at[:mid, :2].set(wp2).at[mid:2 * mid, 2:6].set(wr2)
  return {'w1': w1.astype(jnp.bfloat16),
          'g1': jnp.ones((128,), jnp.float32),
          'b1': jnp.zeros((128,), jnp.float32),
          'w2': w2.astype(jnp.bfloat16),
          'b2': jnp.zeros((128,), jnp.float32)}


def init_params(in_channels, seed=42):
  kg = KeyGen(seed)
  enc_nt = [N_NODE_TYPE - i for i in range(4)]          # [5, 4, 3, 2]
  dec_nt = [N_NODE_TYPE - 4 + 1 + i for i in range(4)]  # [2, 3, 4, 5]
  p = {}
  p['conv1'] = make_gcna(kg, in_channels, ENC_CH[0], enc_nt[0])
  p['encoder'] = [[make_resblock(kg, ENC_CH[i], enc_nt[i])
                   for _ in range(ENC_BLK[i])] for i in range(4)]
  p['downsample'] = [make_conv1x1(kg, ENC_CH[i], ENC_CH[i + 1])
                     for i in range(3)]
  p['upsample'] = [make_conv1x1(kg, DEC_CH[i - 1], DEC_CH[i])
                   for i in range(1, 4)]
  p['decoder'] = [[make_resblock(kg, DEC_CH[i], dec_nt[i])
                   for _ in range(DEC_BLK[i])] for i in range(1, 4)]
  p['heads'] = [make_head(kg, DEC_CH[i], MID_CH) for i in range(4)]
  return p


# ---------------------------------------------------------------------------
# Module forward (glue gather + fused Pallas kernels).
# ---------------------------------------------------------------------------
def graph_conv_features(x_pad, p, graph):
  """Build the padded (Mp, Kp) neighbor feature matrix for a graph conv."""
  # TODO(synk): do this gather inside the kernel (scalar-prefetched neighbor
  # table + HBM x ref).  Per-row DMA gather is too fine-grained for the small
  # per-node rows here, and Mosaic's in-kernel dynamic row gather is not
  # portable across versions, so the gather stays in XLA for now.
  nt = p['n_node_type']
  kp = p['w'].shape[0]
  feats = x_pad.astype(jnp.bfloat16)
  if nt > 1:
    onehot = jax.nn.one_hot(graph['node_type'], nt, dtype=jnp.bfloat16)
    feats = jnp.concatenate([feats, onehot], axis=1)
  neigh = graph['neigh']                                 # (Mp, 7), -1 = no edge
  valid = neigh >= 0
  idx = jnp.where(valid, neigh, 0)
  g = jnp.where(valid[..., None], feats[idx], 0)         # (Mp, 7, C')
  g = g.reshape(feats.shape[0], -1)
  if g.shape[1] != kp:
    g = jnp.pad(g, ((0, 0), (0, kp - g.shape[1])))
  return g


def apply_gcna(x_pad, m, p, graph, act=True, residual=None):
  feat = graph_conv_features(x_pad, p, graph)
  return fused_linear(feat, m, p['w'], p['gamma'], p['beta'],
                      residual=residual, act=act)


def apply_resblock(x_pad, m, p, graph):
  # TODO(synk): with an in-kernel gather both convs of a resblock (and whole
  # coarse depths) could be fused into one pallas_call to cut launch overhead.
  h = apply_gcna(x_pad, m, p['b1'], graph, act=True)
  return apply_gcna(h, m, p['b2'], graph, act=True, residual=x_pad)


def apply_downsample(x_pad, m_child, p):
  """8->1 child mean pooling fused into the conv kernel prologue."""
  m_parent = m_child // 8
  mp_parent = _rnd(max(m_parent, 1), 16)
  need = 8 * mp_parent
  x_pad = _pad_rows(x_pad, need)
  y = fused_linear(x_pad, m_parent, p['w'], p['gamma'], p['beta'], act=True,
                   pool8=True)
  return y, m_parent


def apply_upsample(x_pad, m_parent, p):
  """Conv+BN+ReLU on the parents, repeat 8x afterwards (8x fewer FLOPs)."""
  y = fused_linear(x_pad, m_parent, p['w'], p['gamma'], p['beta'], act=True)
  m_child = 8 * m_parent
  mp_child = _rnd(m_child, 16)
  rep = jnp.repeat(y, 8, axis=0)[:mp_child]   # pad-parent rows repeat as zeros
  return rep, m_child


def apply_heads(x_pad, m_true, p):
  """Merged predict+regress head: two matmuls fused in one pallas_call."""
  mp, cin = x_pad.shape
  if mp <= MAX_HEAD_ROWS:
    kernel = functools.partial(_head_kernel, m_true, 1.0 / m_true, BN_EPS,
                               m_true < mp)
    out = pl.pallas_call(
        kernel,
        out_shape=jax.ShapeDtypeStruct((mp, 128), jnp.float32),
        grid_spec=pltpu.PrefetchScalarGridSpec(
            num_scalar_prefetch=0,
            grid=(1,),
            in_specs=[
                pl.BlockSpec((mp, cin), lambda i: (0, 0)),
                pl.BlockSpec((cin, 128), lambda i: (0, 0)),
                pl.BlockSpec((1, 128), lambda i: (0, 0)),
                pl.BlockSpec((1, 128), lambda i: (0, 0)),
                pl.BlockSpec((128, 128), lambda i: (0, 0)),
                pl.BlockSpec((1, 128), lambda i: (0, 0)),
            ],
            out_specs=pl.BlockSpec((mp, 128), lambda i: (0, 0))),
        compiler_params=pltpu.CompilerParams(
            dimension_semantics=("arbitrary",)),
    )(x_pad.astype(jnp.bfloat16), p['w1'], p['g1'].reshape(1, -1),
      p['b1'].reshape(1, -1), p['w2'], p['b2'].reshape(1, -1))
  else:
    # Large-M fallback: two fused_linear calls (second is matmul + bias only).
    h = fused_linear(x_pad, m_true, p['w1'], p['g1'], p['b1'], act=True)
    out = fused_linear(h, m_true, p['w2'], jnp.ones((128,), jnp.float32),
                       p['b2'], use_bn=False, act=False).astype(jnp.float32)
  return out[:, :2], out[:, 2:6]               # (logit, signal)


def octree_encoder(params, octree):
  convs, counts = {}, {}
  depth = octree['depth']
  m = octree['nnum'][depth]
  # TODO(synk): octree.get_input_feature(feature='L') replaced by stored data.
  x = _pad_rows(octree['feature'].astype(jnp.bfloat16), _rnd(m, 16))
  convs[depth] = apply_gcna(x, m, params['conv1'], octree['graphs'][depth])
  counts[depth] = m
  for i in range(4):
    d = depth - i
    x, m = convs[d], counts[d]
    for blk in params['encoder'][i]:
      x = apply_resblock(x, m, blk, octree['graphs'][d])
    convs[d] = x
    if i < 3:
      convs[d - 1], counts[d - 1] = apply_downsample(x, m,
                                                     params['downsample'][i])
  return convs, counts


def octree_decoder(params, convs, counts, octree_in, octree_out):
  logits, signals = {}, {}
  depth = octree_in['depth'] - 4 + 1
  deconv, m = convs[depth], counts[depth]
  for i in range(4):
    d = depth + i
    g = octree_out['graphs'][d]
    if i > 0:
      deconv, m = apply_upsample(deconv, m, params['upsample'][i - 1])
      # TODO(synk): _octree_align uses ocnn.nn.search_value over octree keys;
      # octree_in / octree_out share structure here so it is the identity.
      deconv = deconv + convs[d]
      for blk in params['decoder'][i - 1]:
        deconv = apply_resblock(deconv, m, blk, g)
    logit, signal = apply_heads(deconv, m, params['heads'][i])
    nnum = octree_out['nnum'][d]
    logits[d] = logit[:nnum]        # real nodes come first in the padded rows
    # TODO(synk): nn.GraphPad (padding with coarser-level leaf nodes) not
    # modelled; identity on the synthetic graph.
    signals[d] = signal[:nnum]
    # TODO(synk): update_octree path (octree_split / octree_grow) omitted.
  return {'logits': logits, 'signals': signals, 'octree_out': octree_out}


def graph_ounet_forward(params, octree_in, octree_out, pos=None,
                        update_octree=False):
  convs, counts = octree_encoder(params, octree_in)
  output = octree_decoder(params, convs, counts, octree_in, octree_out)
  # TODO(synk): mpu.NeuralMPU (multi-level partition-of-unity evaluation at
  # `pos`) omitted (pos=None path).
  return output


# ---------------------------------------------------------------------------
# Synthetic octree construction (neighbor / node-type tables pre-padded to the
# 16-row activation padding so no per-layer re-padding is needed).
# ---------------------------------------------------------------------------
def make_octree(key, depth, in_channels):
  nnum = {depth - i: 512 // (8 ** i) for i in range(4)}   # {4:512,3:64,2:8,1:1}
  keys = jax.random.split(key, 2 * len(nnum) + 1)
  graphs = {}
  for j, d in enumerate(sorted(nnum)):
    n = nnum[d]
    mp = _rnd(n, 16)
    neigh = jax.random.randint(keys[2 * j], (n, N_EDGE_TYPE), -1, n,
                               dtype=jnp.int32)
    node_type = jax.random.randint(keys[2 * j + 1], (n,), 0, d + 1,
                                   dtype=jnp.int32)
    if mp != n:
      neigh = jnp.pad(neigh, ((0, mp - n), (0, 0)), constant_values=-1)
      node_type = jnp.pad(node_type, ((0, mp - n),))
    graphs[d] = {'neigh': neigh, 'node_type': node_type}
  feature = 0.1 * jax.random.normal(keys[-1], (nnum[depth], in_channels),
                                    jnp.float32)
  return {'depth': depth, 'nnum': nnum, 'graphs': graphs, 'feature': feature}


if __name__ == "__main__":
  in_channels = 4
  depth = 4
  octree = make_octree(jax.random.PRNGKey(0), depth, in_channels)
  params = init_params(in_channels, seed=42)

  output = graph_ounet_forward(params, octree, octree, pos=None,
                               update_octree=False)
  jax.block_until_ready((output['logits'], output['signals']))

  # sanity: logits have 2 channels, signals 4 channels, finite, per depth 1..4
  for d in range(1, depth + 1):
    assert output['logits'][d].shape == (octree['nnum'][d], 2)
    assert output['signals'][d].shape == (octree['nnum'][d], 4)
    assert bool(jnp.all(jnp.isfinite(output['logits'][d])))
    assert bool(jnp.all(jnp.isfinite(output['signals'][d])))
  print("KERNEL_OK")
</pallas_src>

<mosaic_0001>
module attributes {stable_mosaic.version = 11 : i64} {
  func.func @_mm_stats_kernel(%arg0: i32, %arg1: i32, %arg2: memref<256x128xbf16, #tpu.memory_space<vmem>>, %arg3: memref<128x32xbf16, #tpu.memory_space<vmem>>, %arg4: memref<256x32xf32, #tpu.memory_space<vmem>>, %arg5: memref<8x32xf32, #tpu.memory_space<vmem>>) attributes {dimension_semantics = [#tpu.dimension_semantics<parallel>, #tpu.dimension_semantics<arbitrary>], iteration_bounds = array<i64: 2, 1>, scalar_prefetch = 0 : i64, scratch_operands = 0 : i64, tpu.core_type = #tpu.core_type<tc>, window_params = [{transform_indices = @transform_0, window_bounds = array<i64: 256, 128>}, {transform_indices = @transform_1, window_bounds = array<i64: 128, 32>}, {transform_indices = @transform_2, window_bounds = array<i64: 256, 32>}, {transform_indices = @transform_3, window_bounds = array<i64: 8, 32>}]} {
    %c0 = arith.constant 0 : index
    %c0_0 = arith.constant 0 : index
    %0 = vector.load %arg2[%c0, %c0_0] : memref<256x128xbf16, #tpu.memory_space<vmem>>, vector<256x128xbf16>
    %c0_1 = arith.constant 0 : index
    %c0_2 = arith.constant 0 : index
    %1 = vector.load %arg3[%c0_1, %c0_2] : memref<128x32xbf16, #tpu.memory_space<vmem>>, vector<128x32xbf16>
    %cst = arith.constant dense<0.000000e+00> : vector<256x32xf32>
    %2 = tpu.matmul %0, %1, %cst {dimension_numbers = #tpu.dot_dimension_numbers<[1], [0], [0], [1], [0, 0, 1, 1], [], []>} : vector<256x128xbf16>, vector<128x32xbf16>, vector<256x32xf32> -> vector<256x32xf32>
    %c0_3 = arith.constant 0 : index
    %c0_4 = arith.constant 0 : index
    %3 = vector.load %arg4[%c0_3, %c0_4] : memref<256x32xf32, #tpu.memory_space<vmem>>, vector<256x32xf32>
    tpu.vector_store %arg4[%c0_3, %c0_4], %2 {strides = array<i32>} : memref<256x32xf32, #tpu.memory_space<vmem>>, vector<256x32xf32>,
    %cst_5 = arith.constant dense<0.000000e+00> : vector<32xf32>
    %4 = vector.multi_reduction <add>, %2, %cst_5 [0] : vector<256x32xf32> to vector<32xf32>
    %5 = vector.shape_cast %4 : vector<32xf32> to vector<1x32xf32>
    %6 = arith.mulf %2, %2 : vector<256x32xf32>
    %cst_6 = arith.constant dense<0.000000e+00> : vector<32xf32>
    %7 = vector.multi_reduction <add>, %6, %cst_6 [0] : vector<256x32xf32> to vector<32xf32>
    %8 = vector.shape_cast %7 : vector<32xf32> to vector<1x32xf32>
    %cst_7 = arith.constant 0.000000e+00 : f32
    %9 = vector.broadcast %cst_7 : f32 to vector<6x32xf32>
    %10 = tpu.concatenate %5, %8, %9 in 0 : vector<1x32xf32>, vector<1x32xf32>, vector<6x32xf32> -> vector<8x32xf32>
    %c0_8 = arith.constant 0 : index
    %c0_9 = arith.constant 0 : index
    %11 = vector.load %arg5[%c0_8, %c0_9] : memref<8x32xf32, #tpu.memory_space<vmem>>, vector<8x32xf32>
    tpu.vector_store %arg5[%c0_8, %c0_9], %10 {strides = array<i32>} : memref<8x32xf32, #tpu.memory_space<vmem>>, vector<8x32xf32>,
    return
  }
  func.func @transform_0(%arg0: i32, %arg1: i32) -> (i32, i32) {
    %c0_i32 = arith.constant 0 : i32
    return %arg0, %arg1 : i32, i32
  }
  func.func @transform_1(%arg0: i32, %arg1: i32) -> (i32, i32) {
    %c0_i32 = arith.constant 0 : i32
    %c0_i32_0 = arith.constant 0 : i32
    return %arg1, %c0_i32 : i32, i32
  }
  func.func @transform_2(%arg0: i32, %arg1: i32) -> (i32, i32) {
    %c0_i32 = arith.constant 0 : i32
    %c0_i32_0 = arith.constant 0 : i32
    return %arg0, %c0_i32 : i32, i32
  }
  func.func @transform_3(%arg0: i32, %arg1: i32) -> (i32, i32) {
    %c0_i32 = arith.constant 0 : i32
    %c0_i32_0 = arith.constant 0 : i32
    return %arg0, %c0_i32 : i32, i32
  }
}

</mosaic_0001>

<bundles_post_ra>
// kernel: tpu_custom_call.1
= control target key start
LH: loop header
LB: loop body
LE: loop exit
PB: predicated region body
PF: predicated region fallthrough
CT: control target
= control target key end

     0   :  { %9 = vsyncpa [#allocation3], 0  ;;  %s1749_s0 = inlined_call_operand.hbm [shape: bf16[512,128], index: 0, kind: input, shape index: {}]   ;;  %s1750_s1 = inlined_call_operand.vmem [shape: bf16[128,32], index: 1, kind: input, shape index: {}]   ;;  %s1751_s2 = inlined_call_operand.vmem [shape: f32[512,32], index: 2, kind: output, shape index: {0}]   ;;  %s1752_s3 = inlined_call_operand.hbm [shape: f32[16,32], index: 3, kind: output, shape index: {1}]  }
   0x1   :  { %11 = vsyncpa [#allocation3 + $0x1], 0 }
   0x2   :  { %12 = vsyncpa [#allocation4], 0 }
   0x3   :  { %14 = vsyncpa [#allocation4 + $0x1], 0  ;;  %s1302_s12 = smov 0   ;;  %s1304_s13 = smov 0  }
   0x4   :  { %s1306_s14 = smov 0   ;;  %s1308_s15 = smov 0  }
   0x5   :  { %s1310_s16 = smov 0   ;;  %s1312_s17 = smov 0  }
   0x6 LB: > { %s946_s18 = sadd.s32 4294967295, %s1276_s17   ;;  %s947_s19 = sadd.s32 4294967294, %s1276_s17   ;;  %s1276_s17 = sphi %s1312_s17, %s20_s17   ;;  %s1272_s16 = sphi %s1310_s16, %s1767_s16   ;;  %s1268_s15 = sphi %s1308_s15, %s1766_s15   ;;  %s1264_s14 = sphi %s1306_s14, %s1765_s14   ;;  %s1260_s13 = sphi %s1304_s13, %s1764_s13   ;;  %s1256_s12 = sphi %s1302_s12, %s1763_s12  }
   0x7   : > { %s32_s20 = sadd.s32 1, %s1272_s16  ;;  %s41_s21 = sadd.s32 1, %s1264_s14 }
   0x8   : > { %p34_p0 = scmp.ge.s32.totalorder %s32_s20, 2  ;;  %p48_p1 = scmp.ne.s32.totalorder %s1264_s14, %s1260_s13 }
   0x9   : > { %p49_p2 = scmp.eq.s32.totalorder %s1276_s17, 0  ;;  %p54_p3 = scmp.ne.s32.totalorder %s1260_s13, %s1256_s12 }
   0xa   : > { %s1769_s20 = smov (%p34_p0, %s32_s20), 0  ;;  %p55_p5 = scmp.eq.s32.totalorder %s946_s18, 0 }
   0xb   : > { %p1343_p4 = por %p49_p2, %p48_p1  ;;  %s36_s23 = ssub.s32 %s1272_s16, %s1769_s20 }
   0xc   : > { %p130_p6 = scmp.eq.s32.totalorder %s946_s18, 1  ;;  %p39_p7 = scmp.eq.s32.totalorder %s36_s23, 0 }
   0xd   : > { %p1349_p8 = por %p55_p5, %p54_p3  ;;  %p136_p10 = scmp.eq.s32.totalorder %s947_s19, 1 }
   0xe   : > { %p1353_p9 = por %p130_p6, %p48_p1  ;;  %p1088_p13 = scmp.lt.s32.totalorder %s1276_s17, 2 }
   0xf   : > { %s1358_s26 = scalar_select %p39_p7, %s1264_s14, %s41_s21  }
  0x10   : > { %s1756_s25 = scalar_select %p1353_p9, 1, 0 }
  0x11   : > { %p1360_p11 = por %p136_p10, %p54_p3  ;;  %s165_s28 = sand.u32 1, %s1264_s14  }
  0x12   : > { %s951_s29 = sshll.u32 %s165_s28, 7  ;;  %s987_s30 = sshll.u32 %s1272_s16, 11 }
  0x13   : > { %s1757_s27 = scalar_select %p1360_p11, 1, 0 }
  0x14   : > { %s1371_s6 = scalar_lea.hbm %s1749_s0, %s987_s30  ;;  %s169_s7 = scalar_lea.vmem [#allocation2], %s951_s29 }
  0x15   : > { %s177_s8 = sshll.u32 %s169_s7, 4  ;;  %p1377_p0 = pnand %p1088_p13, %p1343_p4  ;;  %s1373_s8 = int_to_ptr.vmem [resolvable:$true] %s177_s8 }
  0x16   : > { %s1382_s10 = scalar_lea.sflag [#allocation3], %s165_s28  ;;  %s1164_s11 = scalar_lea.hbm %s1371_s6, 2048 }
  0x17   : > { %p1165_p2 = scmp.ne.s32.totalorder %s1371_s6, %s1164_s11  ;;  %p1166_p3 = pneg %p1377_p0 }
  0x18   : > { %s1169_s21 = scalar_lea.hbm %s1749_s0, 4096  ;;  %p1170_p4 = scmp.lt.u32.totalorder %s1371_s6, %s1749_s0 }
  0x19   : > { %p1167_p5 = pnand %p1166_p3, %p1165_p2  ;;  %p1171_p7 = scmp.lt.u32.totalorder %s1169_s21, %s1164_s11 }
  0x1a   : > { %p1173_p13 = scmp.lt.u32.totalorder %s1164_s11, %s1371_s6 }
  0x1b   : > { %p1168_p6 = pneg %p1167_p5  ;;  %p1172_p10 = por %p1171_p7, %p1170_p4 }
  0x1d   : > { %p1174_p12 = por %p1173_p13, %p1172_p10 }
  0x1f   : > { %p1175_p1 = pnand %p1174_p12, %p1168_p6 }
  0x21   : > { %1178 = shalt.err (!%p1175_p1)
}
  0x22   : > { %s1179_s28 = scalar_lea.vmem %s1373_s8, 2048  ;;  %s1278_s29 = smov [#allocation2]  }
  0x23   : > { %p1180_p2 = scmp.ne.s32.totalorder %s1373_s8, %s1179_s28  ;;  %s1184_s30 = sshll.u32 %s1278_s29, 4  ;;  %s1185_s30 = int_to_ptr.vmem [resolvable:$false] %s1184_s30 }
  0x24   : > { %s1186_s4 = scalar_lea.vmem %s1185_s30, 4096  ;;  %p1187_p9 = scmp.lt.s32.totalorder %s1373_s8, %s1185_s30 }
  0x25   : > { %p1182_p5 = pnand %p1180_p2, %p1166_p3  ;;  %p1188_p4 = scmp.lt.s32.totalorder %s1186_s4, %s1179_s28 }
  0x27   : > { %p1183_p11 = pneg %p1182_p5  ;;  %p1189_p7 = por %p1188_p4, %p1187_p9 }
  0x29   : > { %p1190_p10 = pnand %p1189_p7, %p1183_p11 }
  0x2b   : > { %1193 = shalt.err (!%p1190_p10)
}
  0x2c   : > { %s1279_s5 = smov 64   ;;  %s1280_s7 = smov 4  }
  0x2d   : > { %1083 = dma.hbm_to_vmem [thread:$0]  (!%p1377_p0), %s1371_s6, 2048, %s1373_s8, %s1382_s10, %s1279_s5, %s1279_s5, %s1280_s7  }
  0x2e   : > { %p185_p12 = scmp.lt.s32.totalorder %s1276_s17, 3  ;;  %p1759_p1 = scmp.ge.s32.totalorder %s1276_s17, 1 }
  0x30   : > { %p186_p3 = pnand %p1759_p1, %p185_p12 }
  0x31   : > { %s1414_s11 = sand.u32 (!%p186_p3), 1, %s1260_s13  }
  0x32   : > { %189 = sbr.rel (%p186_p3) target bundleno = 399 (0x18f), region = 28  ;;  %s955_s18 = sshll.u32 (!%p186_p3), %s1414_s11, 7 }
  0x33   : > { %s192_s19 = scalar_lea.sflag (!%p186_p3), [#allocation3], %s1414_s11  ;;  %s1418_s21 = scalar_lea.vmem (!%p186_p3), [#allocation2], %s955_s18 }
  0x39   : > { %1247 = dma.done.wait (%p1349_p8), %s192_s19, 2048  }
  0x3a   : > { %1249 = vsyncadd (%p1349_p8), %s192_s19, 4294965248  ;;  %v1140_v0 = vld [vmem:[%s1750_s1] sm:$0xff]   ;;  %v1141_v1 = vld [vmem:[%s1750_s1 + $0x8] sm:$0xff]   ;;  %s957_s8 = sshll.u32 %s1268_s15, 5  ;;  %vm595_vm0 = vcmask 261120   ;;  %vm798_vm1 = vcmask 1040384  }
  0x3b   : > { %1012 = vmatprep.subr.bf16.mxu0 %v1140_v0  ;;  %1060 = vmatprep.subr.bf16.mxu1 %v1140_v0  ;;  %v1142_v2 = vld [vmem:[%s1750_s1 + $0x10] sm:$0xff]   ;;  %v1143_v3 = vld [vmem:[%s1750_s1 + $0x18] sm:$0xff]   ;;  %v1148_v4 = vld [vmem:[%s1418_s21] sm:$0xff]   ;;  %p236_p8 = scmp.lt.s32.totalorder %s957_s8, 63  ;;  %s984_s24 = sshll.u32 %s1268_s15, 7  ;;  %vm800_vm2 = vcmask 1041408  }
  0x3c   : > { %1013 = vmatpush3.bf16.msra.mxu0 %v1140_v0  ;;  %1068 = vmatpush3.bf16.msra.mxu1 %v1140_v0  ;;  %v1144_v5 = vld [vmem:[%s1750_s1 + $0x20] sm:$0xff]   ;;  %v1145_v6 = vld [vmem:[%s1750_s1 + $0x28] sm:$0xff]   ;;  %v1146_v8 = vld [vmem:[%s1750_s1 + $0x30] sm:$0xff]   ;;  %s1699_s5 = scalar_lea.hbm %s1752_s3, %s984_s24  ;;  %s809_s15 = scalar_lea.sflag [#allocation4], %s1414_s11 }
  0x3d   : > { %1014 = vmatprep.subr.bf16.mxu0 %v1141_v1  ;;  %1061 = vmatprep.subr.bf16.mxu1 %v1141_v1  ;;  %v1156_v7 = vld [vmem:[%s1418_s21 + $0x40] sm:$0xff]   ;;  %v1147_v9 = vld [vmem:[%s1750_s1 + $0x38] sm:$0xff]   ;;  %v1149_v10 = vld [vmem:[%s1418_s21 + $0x8] sm:$0xff]   ;;  %s1771_s8 = smov (!%p236_p8, %s957_s8), 63  ;;  %p1760_p11 = scmp.ne.s32.totalorder %s1756_s25, 0 }
  0x3e   : > { %1028 = vmatprep.mubr.bf16.mxu0 %v1148_v4  ;;  %1044 = vmatprep.mubr.bf16.mxu1 %v1156_v7  ;;  %v1157_v11 = vld [vmem:[%s1418_s21 + $0x48] sm:$0xff]   ;;  %v1150_v12 = vld [vmem:[%s1418_s21 + $0x10] sm:$0xff]   ;;  %v1151_v14 = vld [vmem:[%s1418_s21 + $0x18] sm:$0xff]   ;;  %s958_s9 = sshll.u32 %s1771_s8, 3  ;;  %s1281_s18 = smov [#allocation5]  }
  0x3f   : > { %v1158_v13 = vld [vmem:[%s1418_s21 + $0x50] sm:$0xff]   ;;  %v1159_v15 = vld [vmem:[%s1418_s21 + $0x58] sm:$0xff]   ;;  %v1152_v16 = vld [vmem:[%s1418_s21 + $0x20] sm:$0xff]   ;;  %s1468_s23 = scalar_lea.vmem %s1751_s2, %s958_s9  ;;  %s1198_s19 = sshll.u32 %s1281_s18, 4  ;;  %s1199_s19 = int_to_ptr.vmem [resolvable:$false] %s1198_s19 }
  0x40   : > { %1015 = vmatpush3.bf16.msra.mxu0 %v1141_v1  ;;  %1069 = vmatpush3.bf16.msra.mxu1 %v1141_v1  ;;  %v1160_v17 = vld [vmem:[%s1418_s21 + $0x60] sm:$0xff]   ;;  %v1153_v18 = vld [vmem:[%s1418_s21 + $0x28] sm:$0xff]   ;;  %v1154_v20 = vld [vmem:[%s1418_s21 + $0x30] sm:$0xff]   ;;  %s1200_s6 = scalar_lea.vmem %s1199_s19, 256 }
  0x41   : > { %1016 = vmatprep.subr.bf16.mxu0 %v1142_v2  ;;  %1062 = vmatprep.subr.bf16.mxu1 %v1142_v2  ;;  %v1161_v19 = vld [vmem:[%s1418_s21 + $0x68] sm:$0xff]   ;;  %v1162_v21 = vld [vmem:[%s1418_s21 + $0x70] sm:$0xff]   ;;  %v1155_v22 = vld [vmem:[%s1418_s21 + $0x38] sm:$0xff]  }
  0x42   : > { %v1163_v23 = vld [vmem:[%s1418_s21 + $0x78] sm:$0xff]   ;;  %s956_s21 = sshll.u32 %s1414_s11, 3 }
  0x43   : > { %s227_s28 = scalar_lea.vmem [#allocation5], %s956_s21 }
  0x44   : > { %1017 = vmatpush3.bf16.msra.mxu0 %v1142_v2  ;;  %1070 = vmatpush3.bf16.msra.mxu1 %v1142_v2  ;;  %s826_s29 = sshll.u32 %s227_s28, 4  ;;  %s1701_s29 = int_to_ptr.vmem [resolvable:$true] %s826_s29 }
  0x45   : > { %1018 = vmatprep.subr.bf16.mxu0 %v1143_v3  ;;  %1063 = vmatprep.subr.bf16.mxu1 %v1143_v3  ;;  %s1194_s7 = scalar_lea.vmem %s1701_s29, 128  ;;  %p1201_p13 = scmp.lt.s32.totalorder %s1701_s29, %s1199_s19 }
  0x46   : > { %p1195_p9 = scmp.ne.s32.totalorder %s1701_s29, %s1194_s7  ;;  %p1202_p2 = scmp.lt.s32.totalorder %s1200_s6, %s1194_s7 }
  0x48   : > { %1019 = vmatpush3.bf16.msra.mxu0 %v1143_v3  ;;  %1071 = vmatpush3.bf16.msra.mxu1 %v1143_v3  ;;  %p1196_p0 = pnand %p1195_p9, %p1760_p11  ;;  %p1203_p5 = por %p1202_p2, %p1201_p13 }
  0x49   : > { %1020 = vmatprep.subr.bf16.mxu0 %v1144_v5  ;;  %1064 = vmatprep.subr.bf16.mxu1 %v1144_v5 }
  0x4a   : > { %p1197_p6 = pneg %p1196_p0 }
  0x4c   : > { %1021 = vmatpush3.bf16.msra.mxu0 %v1144_v5  ;;  %1072 = vmatpush3.bf16.msra.mxu1 %v1144_v5  ;;  %p1204_p4 = pnand %p1203_p5, %p1197_p6 }
  0x4d   : > { %1022 = vmatprep.subr.bf16.mxu0 %v1145_v6  ;;  %1065 = vmatprep.subr.bf16.mxu1 %v1145_v6 }
  0x50   : > { %1023 = vmatpush3.bf16.msra.mxu0 %v1145_v6  ;;  %1073 = vmatpush3.bf16.msra.mxu1 %v1145_v6 }
  0x51   : > { %1024 = vmatprep.subr.bf16.mxu0 %v1146_v8  ;;  %1066 = vmatprep.subr.bf16.mxu1 %v1146_v8 }
  0x54   : > { %1025 = vmatpush3.bf16.msra.mxu0 %v1146_v8  ;;  %1074 = vmatpush3.bf16.msra.mxu1 %v1146_v8 }
  0x55   : > { %1026 = vmatprep.subr.bf16.mxu0 %v1147_v9  ;;  %1067 = vmatprep.subr.bf16.mxu1 %v1147_v9 }
  0x58   : > { %1027 = vmatpush3.bf16.msra.mxu0 %v1147_v9  ;;  %1075 = vmatpush3.bf16.msra.mxu1 %v1147_v9 }
  0x5b   : > { %1029 = vmatmul.mubr.bf16.vlgmr.msra.gmra.mrb[0].mxu0 %v1149_v10  ;;  %1045 = vmatmul.mubr.bf16.vlgmr.msra.gmra.mrb[0].mxu1 %v1157_v11 }
  0x5c   : > { %1032 = vmatprep.mubr.bf16.mxu0 %v1150_v12  ;;  %1048 = vmatprep.mubr.bf16.mxu1 %v1158_v13 }
  0x63   : > { %1033 = vmatmul.mubr.bf16.gmra.mrb[4].mxu0 %v1151_v14  ;;  %1049 = vmatmul.mubr.bf16.gmra.mrb[4].mxu1 %v1159_v15 }
  0x64   : > { %1036 = vmatprep.mubr.bf16.mxu0 %v1152_v16  ;;  %1052 = vmatprep.mubr.bf16.mxu1 %v1160_v17 }
  0x6b   : > { %1037 = vmatmul.mubr.bf16.gmra.mrb[8].mxu0 %v1153_v18  ;;  %1053 = vmatmul.mubr.bf16.gmra.mrb[8].mxu1 %v1161_v19 }
  0x6c   : > { %1040 = vmatprep.mubr.bf16.mxu0 %v1154_v20  ;;  %1056 = vmatprep.mubr.bf16.mxu1 %v1162_v21 }
  0x73   : > { %1041 = vmatmul.mubr.bf16.gmra.mrb[12].mxu0 %v1155_v22  ;;  %1057 = vmatmul.mubr.bf16.gmra.mrb[12].mxu1 %v1163_v23 }
 0x12e   : > { %v1030_v24 = vpop.f32.mrb[0].mxu0  ;;  %v1470_v25 = vpop.f32.mrb[0].mxu1 }
 0x12f   : > { %598 = vst.msk [vmem:[%s1468_s23 + $0x10] sm:$0xff] %vm595_vm0, %v1030_v24  ;;  %v468_v26 = vpop.f32.mrb[1].mxu0  ;;  %614 = vst.msk [vmem:[%s1468_s23 + $0x90] sm:$0xff] %vm595_vm0, %v1470_v25  ;;  %v1477_v27 = vpop.f32.mrb[1].mxu1  ;;  %v699_v33 = vmul.f32 %v1030_v24, %v1030_v24  ;;  %v631_v38 = vsel %vm595_vm0, %v1030_v24, 0.0 }
 0x130   : > { %596 = vst.msk [vmem:[%s1468_s23] sm:$0xff] %vm595_vm0, %v468_v26  ;;  %v697_v28 = vmul.f32 %v468_v26, %v468_v26  ;;  %v1031_v29 = vpop.f32.mrb[2].mxu0  ;;  %612 = vst.msk [vmem:[%s1468_s23 + $0x80] sm:$0xff] %vm595_vm0, %v1477_v27  ;;  %v1484_v30 = vpop.f32.mrb[2].mxu1  ;;  %v628_v34 = vsel %vm595_vm0, %v468_v26, 0.0 }
 0x131   : > { %599 = vst.msk [vmem:[%s1468_s23 + $0x18] sm:$0xff] %vm595_vm0, %v1031_v29  ;;  %v471_v31 = vpop.f32.mrb[3].mxu0  ;;  %615 = vst.msk [vmem:[%s1468_s23 + $0x98] sm:$0xff] %vm595_vm0, %v1484_v30  ;;  %v1491_v32 = vpop.f32.mrb[3].mxu1  ;;  %v700_v40 = vmul.f32 %v1031_v29, %v1031_v29  ;;  %v732_v44 = vsel %vm595_vm0, %v699_v33, 0.0  ;;  %v633_v45 = vsel %vm595_vm0, %v1031_v29, 0.0 }
 0x132   : > { %597 = vst.msk [vmem:[%s1468_s23 + $0x8] sm:$0xff] %vm595_vm0, %v471_v31  ;;  %v629_v35 = vsel %vm595_vm0, %v471_v31, 0.0  ;;  %v698_v36 = vmul.f32 %v471_v31, %v471_v31  ;;  %613 = vst.msk [vmem:[%s1468_s23 + $0x88] sm:$0xff] %vm595_vm0, %v1491_v32  ;;  %v729_v39 = vsel %vm595_vm0, %v697_v28, 0.0 }
 0x133   : > { %v630_v37 = vadd.f32 %v629_v35, %v628_v34  ;;  %v734_v52 = vsel %vm595_vm0, %v700_v40, 0.0 }
 0x134   : > { %v730_v41 = vsel %vm595_vm0, %v698_v36, 0.0 }
 0x135   : > { %v632_v42 = vadd.f32 %v631_v38, %v630_v37  ;;  %v731_v43 = vadd.f32 %v730_v41, %v729_v39 }
 0x136   : > { %v1034_v46 = vpop.f32.mrb[4].mxu0  ;;  %v1505_v47 = vpop.f32.mrb[4].mxu1 }
 0x137   : > { %v733_v48 = vadd.f32 %v732_v44, %v731_v43  ;;  %602 = vst.msk [vmem:[%s1468_s23 + $0x30] sm:$0xff] %vm595_vm0, %v1034_v46  ;;  %v484_v49 = vpop.f32.mrb[5].mxu0  ;;  %v634_v50 = vadd.f32 %v633_v45, %v632_v42  ;;  %618 = vst.msk [vmem:[%s1468_s23 + $0xb0] sm:$0xff] %vm595_vm0, %v1505_v47  ;;  %v1512_v51 = vpop.f32.mrb[5].mxu1  ;;  %v703_v61 = vmul.f32 %v1034_v46, %v1034_v46  ;;  %v639_v3 = vsel %vm595_vm0, %v1034_v46, 0.0 }
 0x138   : > { %600 = vst.msk [vmem:[%s1468_s23 + $0x20] sm:$0xff] %vm595_vm0, %v484_v49  ;;  %v635_v53 = vsel %vm595_vm0, %v484_v49, 0.0  ;;  %v701_v54 = vmul.f32 %v484_v49, %v484_v49  ;;  %v1035_v55 = vpop.f32.mrb[6].mxu0  ;;  %616 = vst.msk [vmem:[%s1468_s23 + $0xa0] sm:$0xff] %vm595_vm0, %v1512_v51  ;;  %v1521_v56 = vpop.f32.mrb[6].mxu1 }
 0x139   : > { %v636_v57 = vadd.f32 %v635_v53, %v634_v50  ;;  %v735_v58 = vadd.f32 %v734_v52, %v733_v48  ;;  %603 = vst.msk [vmem:[%s1468_s23 + $0x38] sm:$0xff] %vm595_vm0, %v1035_v55  ;;  %v487_v59 = vpop.f32.mrb[7].mxu0  ;;  %619 = vst.msk [vmem:[%s1468_s23 + $0xb8] sm:$0xff] %vm595_vm0, %v1521_v56  ;;  %v1528_v60 = vpop.f32.mrb[7].mxu1  ;;  %v704_v4 = vmul.f32 %v1035_v55, %v1035_v55  ;;  %v740_v8 = vsel %vm595_vm0, %v703_v61, 0.0 }
 0x13a   : > { %v736_v62 = vsel %vm595_vm0, %v701_v54, 0.0  ;;  %601 = vst.msk [vmem:[%s1468_s23 + $0x28] sm:$0xff] %vm595_vm0, %v487_v59  ;;  %v637_v63 = vsel %vm595_vm0, %v487_v59, 0.0  ;;  %v702_v0 = vmul.f32 %v487_v59, %v487_v59  ;;  %617 = vst.msk [vmem:[%s1468_s23 + $0xa8] sm:$0xff] %vm595_vm0, %v1528_v60  ;;  %v641_v9 = vsel %vm595_vm0, %v1035_v55, 0.0 }
 0x13b   : > { %v737_v1 = vadd.f32 %v736_v62, %v735_v58  ;;  %v638_v2 = vadd.f32 %v637_v63, %v636_v57  ;;  %v742_v16 = vsel %vm595_vm0, %v704_v4, 0.0 }
 0x13c   : > { %v738_v5 = vsel %vm595_vm0, %v702_v0, 0.0 }
 0x13d   : > { %v640_v6 = vadd.f32 %v639_v3, %v638_v2  ;;  %v739_v7 = vadd.f32 %v738_v5, %v737_v1 }
 0x13e   : > { %v1038_v10 = vpop.f32.mrb[8].mxu0  ;;  %v1541_v11 = vpop.f32.mrb[8].mxu1 }
 0x13f   : > { %v741_v12 = vadd.f32 %v740_v8, %v739_v7  ;;  %606 = vst.msk [vmem:[%s1468_s23 + $0x50] sm:$0xff] %vm595_vm0, %v1038_v10  ;;  %v500_v13 = vpop.f32.mrb[9].mxu0  ;;  %v642_v14 = vadd.f32 %v641_v9, %v640_v6  ;;  %622 = vst.msk [vmem:[%s1468_s23 + $0xd0] sm:$0xff] %vm595_vm0, %v1541_v11  ;;  %v1548_v15 = vpop.f32.mrb[9].mxu1  ;;  %v707_v26 = vmul.f32 %v1038_v10, %v1038_v10  ;;  %v647_v35 = vsel %vm595_vm0, %v1038_v10, 0.0 }
 0x140   : > { %604 = vst.msk [vmem:[%s1468_s23 + $0x40] sm:$0xff] %vm595_vm0, %v500_v13  ;;  %v643_v17 = vsel %vm595_vm0, %v500_v13, 0.0  ;;  %v705_v18 = vmul.f32 %v500_v13, %v500_v13  ;;  %v1039_v19 = vpop.f32.mrb[10].mxu0  ;;  %620 = vst.msk [vmem:[%s1468_s23 + $0xc0] sm:$0xff] %vm595_vm0, %v1548_v15  ;;  %v1557_v20 = vpop.f32.mrb[10].mxu1  ;;  %v713_v6 = vmul.f32 %v1477_v27, %v1477_v27 }
 0x141   : > { %v644_v21 = vadd.f32 %v643_v17, %v642_v14  ;;  %v743_v22 = vadd.f32 %v742_v16, %v741_v12  ;;  %607 = vst.msk [vmem:[%s1468_s23 + $0x58] sm:$0xff] %vm595_vm0, %v1039_v19  ;;  %v503_v23 = vpop.f32.mrb[11].mxu0  ;;  %623 = vst.msk [vmem:[%s1468_s23 + $0xd8] sm:$0xff] %vm595_vm0, %v1557_v20  ;;  %v1564_v24 = vpop.f32.mrb[11].mxu1  ;;  %v708_v36 = vmul.f32 %v1039_v19, %v1039_v19  ;;  %v748_v40 = vsel %vm595_vm0, %v707_v26, 0.0 }
 0x142   : > { %v744_v28 = vsel %vm595_vm0, %v705_v18, 0.0  ;;  %605 = vst.msk [vmem:[%s1468_s23 + $0x48] sm:$0xff] %vm595_vm0, %v503_v23  ;;  %v645_v29 = vsel %vm595_vm0, %v503_v23, 0.0  ;;  %v706_v31 = vmul.f32 %v503_v23, %v503_v23  ;;  %621 = vst.msk [vmem:[%s1468_s23 + $0xc8] sm:$0xff] %vm595_vm0, %v1564_v24  ;;  %v649_v41 = vsel %vm595_vm0, %v1039_v19, 0.0 }
 0x143   : > { %v745_v33 = vadd.f32 %v744_v28, %v743_v22  ;;  %v646_v34 = vadd.f32 %v645_v29, %v644_v21  ;;  %v750_v49 = vsel %vm595_vm0, %v708_v36, 0.0  ;;  %v659_v12 = vsel %vm595_vm0, %v1477_v27, 0.0 }
 0x144   : > { %v746_v37 = vsel %vm595_vm0, %v706_v31, 0.0  ;;  %v760_v17 = vsel %vm595_vm0, %v713_v6, 0.0  ;;  %v714_v18 = vmul.f32 %v1491_v32, %v1491_v32  ;;  %v715_v22 = vmul.f32 %v1470_v25, %v1470_v25 }
 0x145   : > { %v648_v38 = vadd.f32 %v647_v35, %v646_v34  ;;  %v747_v39 = vadd.f32 %v746_v37, %v745_v33  ;;  %v661_v23 = vsel %vm595_vm0, %v1491_v32, 0.0  ;;  %v663_v27 = vsel %vm595_vm0, %v1470_v25, 0.0 }
 0x146   : > { %v1042_v42 = vpop.f32.mrb[12].mxu0  ;;  %v1577_v43 = vpop.f32.mrb[12].mxu1  ;;  %v716_v29 = vmul.f32 %v1484_v30, %v1484_v30  ;;  %v762_v31 = vsel %vm595_vm0, %v714_v18, 0.0  ;;  %v717_v33 = vmul.f32 %v1512_v51, %v1512_v51  ;;  %v764_v36 = vsel %vm595_vm0, %v715_v22, 0.0 }
 0x147   : > { %v749_v44 = vadd.f32 %v748_v40, %v747_v39  ;;  %610 = vst.msk [vmem:[%s1468_s23 + $0x70] sm:$0xff] %vm595_vm0, %v1042_v42  ;;  %v516_v45 = vpop.f32.mrb[13].mxu0  ;;  %v650_v46 = vadd.f32 %v649_v41, %v648_v38  ;;  %626 = vst.msk [vmem:[%s1468_s23 + $0xf0] sm:$0xff] %vm595_vm0, %v1577_v43  ;;  %v1584_v48 = vpop.f32.mrb[13].mxu1  ;;  %v711_v61 = vmul.f32 %v1042_v42, %v1042_v42  ;;  %v655_v3 = vsel %vm595_vm0, %v1042_v42, 0.0 }
 0x148   : > { %608 = vst.msk [vmem:[%s1468_s23 + $0x60] sm:$0xff] %vm595_vm0, %v516_v45  ;;  %v651_v50 = vsel %vm595_vm0, %v516_v45, 0.0  ;;  %v709_v52 = vmul.f32 %v516_v45, %v516_v45  ;;  %v1043_v53 = vpop.f32.mrb[14].mxu0  ;;  %624 = vst.msk [vmem:[%s1468_s23 + $0xe0] sm:$0xff] %vm595_vm0, %v1584_v48  ;;  %v1593_v54 = vpop.f32.mrb[14].mxu1  ;;  %v665_v32 = vsel %vm595_vm0, %v1484_v30, 0.0  ;;  %v718_v41 = vmul.f32 %v1528_v60, %v1528_v60 }
 0x149   : > { %v652_v55 = vadd.f32 %v651_v50, %v650_v46  ;;  %v751_v57 = vadd.f32 %v750_v49, %v749_v44  ;;  %611 = vst.msk [vmem:[%s1468_s23 + $0x78] sm:$0xff] %vm595_vm0, %v1043_v53  ;;  %v519_v58 = vpop.f32.mrb[15].mxu0  ;;  %627 = vst.msk [vmem:[%s1468_s23 + $0xf8] sm:$0xff] %vm595_vm0, %v1593_v54  ;;  %v1600_v59 = vpop.f32.mrb[15].mxu1  ;;  %v712_v4 = vmul.f32 %v1043_v53, %v1043_v53  ;;  %v756_v9 = vsel %vm595_vm0, %v711_v61, 0.0 }
 0x14a   : > { %v752_v62 = vsel %vm595_vm0, %v709_v52, 0.0  ;;  %609 = vst.msk [vmem:[%s1468_s23 + $0x68] sm:$0xff] %vm595_vm0, %v519_v58  ;;  %v653_v63 = vsel %vm595_vm0, %v519_v58, 0.0  ;;  %v710_v0 = vmul.f32 %v519_v58, %v519_v58  ;;  %625 = vst.msk [vmem:[%s1468_s23 + $0xe8] sm:$0xff] %vm595_vm0, %v1600_v59  ;;  %v657_v10 = vsel %vm595_vm0, %v1043_v53, 0.0 }
 0x14b   : > { %v753_v1 = vadd.f32 %v752_v62, %v751_v57  ;;  %v654_v2 = vadd.f32 %v653_v63, %v652_v55  ;;  %v758_v16 = vsel %vm595_vm0, %v712_v4, 0.0  ;;  %v667_v37 = vsel %vm595_vm0, %v1512_v51, 0.0 }
 0x14c   : > { %v754_v5 = vsel %vm595_vm0, %v710_v0, 0.0  ;;  %v766_v39 = vsel %vm595_vm0, %v716_v29, 0.0  ;;  %v768_v40 = vsel %vm595_vm0, %v717_v33, 0.0  ;;  %v719_v45 = vmul.f32 %v1505_v47, %v1505_v47 }
 0x14d   : > { %v656_v7 = vadd.f32 %v655_v3, %v654_v2  ;;  %v755_v8 = vadd.f32 %v754_v5, %v753_v1  ;;  %v669_v30 = vsel %vm595_vm0, %v1528_v60, 0.0  ;;  %v671_v51 = vsel %vm595_vm0, %v1505_v47, 0.0 }
 0x14e   : > { %v720_v50 = vmul.f32 %v1521_v56, %v1521_v56  ;;  %v770_v52 = vsel %vm595_vm0, %v718_v41, 0.0  ;;  %v721_v53 = vmul.f32 %v1548_v15, %v1548_v15  ;;  %v772_v58 = vsel %vm595_vm0, %v719_v45, 0.0 }
 0x14f   : > { %v757_v13 = vadd.f32 %v756_v9, %v755_v8  ;;  %v658_v14 = vadd.f32 %v657_v10, %v656_v7  ;;  %v673_v60 = vsel %vm595_vm0, %v1521_v56, 0.0  ;;  %v675_v61 = vsel %vm595_vm0, %v1548_v15, 0.0 }
 0x150   : > { %v774_v63 = vsel %vm595_vm0, %v720_v50, 0.0  ;;  %v776_v0 = vsel %vm595_vm0, %v721_v53, 0.0  ;;  %v722_v1 = vmul.f32 %v1564_v24, %v1564_v24  ;;  %v723_v4 = vmul.f32 %v1541_v11, %v1541_v11 }
 0x151   : > { %v660_v19 = vadd.f32 %v659_v12, %v658_v14  ;;  %v759_v21 = vadd.f32 %v758_v16, %v757_v13  ;;  %v677_v56 = vsel %vm595_vm0, %v1564_v24, 0.0  ;;  %v679_v15 = vsel %vm595_vm0, %v1541_v11, 0.0 }
 0x152   : > { %v724_v7 = vmul.f32 %v1557_v20, %v1557_v20  ;;  %v778_v8 = vsel %vm595_vm0, %v722_v1, 0.0  ;;  %v725_v9 = vmul.f32 %v1584_v48, %v1584_v48  ;;  %v780_v13 = vsel %vm595_vm0, %v723_v4, 0.0 }
 0x153   : > { %v761_v26 = vadd.f32 %v760_v17, %v759_v21  ;;  %v662_v28 = vadd.f32 %v661_v23, %v660_v19  ;;  %v681_v24 = vsel %vm595_vm0, %v1557_v20, 0.0  ;;  %v683_v14 = vsel %vm595_vm0, %v1584_v48, 0.0 }
 0x154   : > { %v782_v17 = vsel %vm595_vm0, %v724_v7, 0.0  ;;  %v784_v18 = vsel %vm595_vm0, %v725_v9, 0.0  ;;  %v726_v19 = vmul.f32 %v1600_v59, %v1600_v59  ;;  %v727_v23 = vmul.f32 %v1577_v43, %v1577_v43 }
 0x155   : > { %v664_v34 = vadd.f32 %v663_v27, %v662_v28  ;;  %v763_v35 = vadd.f32 %v762_v31, %v761_v26  ;;  %v685_v20 = vsel %vm595_vm0, %v1600_v59, 0.0  ;;  %v687_v48 = vsel %vm595_vm0, %v1577_v43, 0.0 }
 0x156   : > { %v728_v27 = vmul.f32 %v1593_v54, %v1593_v54  ;;  %v786_v29 = vsel %vm595_vm0, %v726_v19, 0.0 }
 0x157   : > { %v765_v38 = vadd.f32 %v764_v36, %v763_v35  ;;  %v666_v25 = vadd.f32 %v665_v32, %v664_v34  ;;  %v788_v34 = vsel %vm595_vm0, %v727_v23, 0.0  ;;  %v689_v35 = vsel %vm595_vm0, %v1593_v54, 0.0 }
 0x158   : > { %v790_v32 = vsel %vm595_vm0, %v728_v27, 0.0 }
 0x159   : > { %v668_v42 = vadd.f32 %v667_v37, %v666_v25  ;;  %v767_v44 = vadd.f32 %v766_v39, %v765_v38 }
 0x15b   : > { %v769_v46 = vadd.f32 %v768_v40, %v767_v44  ;;  %v670_v49 = vadd.f32 %v669_v30, %v668_v42 }
 0x15d   : > { %v672_v55 = vadd.f32 %v671_v51, %v670_v49  ;;  %v771_v57 = vadd.f32 %v770_v52, %v769_v46 }
 0x15f   : > { %v773_v62 = vadd.f32 %v772_v58, %v771_v57  ;;  %v674_v47 = vadd.f32 %v673_v60, %v672_v55 }
 0x161   : > { %v676_v2 = vadd.f32 %v675_v61, %v674_v47  ;;  %v775_v3 = vadd.f32 %v774_v63, %v773_v62 }
 0x163   : > { %v777_v5 = vadd.f32 %v776_v0, %v775_v3  ;;  %v678_v6 = vadd.f32 %v677_v56, %v676_v2 }
 0x165   : > { %v680_v10 = vadd.f32 %v679_v15, %v678_v6  ;;  %v779_v12 = vadd.f32 %v778_v8, %v777_v5 }
 0x167   : > { %v781_v16 = vadd.f32 %v780_v13, %v779_v12  ;;  %v682_v11 = vadd.f32 %v681_v24, %v680_v10 }
 0x169   : > { %v684_v21 = vadd.f32 %v683_v14, %v682_v11  ;;  %v783_v22 = vadd.f32 %v782_v17, %v781_v16 }
 0x16b   : > { %v785_v26 = vadd.f32 %v784_v18, %v783_v22  ;;  %v686_v28 = vadd.f32 %v685_v20, %v684_v21 }
 0x16d   : > { %v688_v31 = vadd.f32 %v687_v48, %v686_v28  ;;  %v787_v33 = vadd.f32 %v786_v29, %v785_v26 }
 0x16f   : > { %v690_v36 = vadd.f32 %v689_v35, %v688_v31  ;;  %v789_v59 = vadd.f32 %v788_v34, %v787_v33 }
 0x171   : > { %v691_v37 = vrot.slane %v690_v36, 4  ;;  %v791_v43 = vadd.f32 %v790_v32, %v789_v59 }
 0x173   : > { %v692_v38 = vadd.f32 %v691_v37, %v690_v36  ;;  %v792_v25 = vrot.slane %v791_v43, 4 }
 0x175   : > { %v693_v39 = vrot.slane %v692_v38, 2  ;;  %v793_v40 = vadd.f32 %v792_v25, %v791_v43 }
 0x177   : > { %v694_v41 = vadd.f32 %v693_v39, %v692_v38  ;;  %v794_v42 = vrot.slane %v793_v40, 2 }
 0x179   : > { %v695_v44 = vrot.slane %v694_v41, 1  ;;  %v795_v45 = vadd.f32 %v794_v42, %v793_v40 }
 0x17b   : > { %v796_v30 = vrot.slane %v795_v45, 1  ;;  %v696_v54 = vadd.f32 %v695_v44, %v694_v41 }
 0x17d   : > { %v797_v46 = vadd.f32 %v796_v30, %v795_v45 }
 0x17f   : > { %v799_v49 = vsel %vm798_vm1, %v696_v54, %v797_v46 }
 0x180   : > { %v801_v51 = vsel %vm800_vm2, %v799_v49, 0.0 }
 0x181   : > { %802 = vst.msk [vmem:[%s227_s28] sm:$0xff] %vm595_vm0, %v801_v51 }
 0x182   : > { %1207 = shalt.err (!%p1204_p4)
}
 0x183   : > { %s1208_s11 = scalar_lea.hbm %s1699_s5, 128  ;;  %s1212_s10 = scalar_lea.hbm %s1752_s3, 256 }
 0x184   : > { %p1209_p7 = scmp.ne.s32.totalorder %s1699_s5, %s1208_s11  ;;  %p1213_p1 = scmp.lt.u32.totalorder %s1699_s5, %s1752_s3 }
 0x185   : > { %p1214_p3 = scmp.lt.u32.totalorder %s1212_s10, %s1208_s11  ;;  %p1216_p9 = scmp.lt.u32.totalorder %s1208_s11, %s1699_s5 }
 0x186   : > { %p1210_p10 = pnand %p1209_p7, %p1760_p11 }
 0x187   : > { %p1215_p8 = por %p1214_p3, %p1213_p1 }
 0x188   : > { %p1211_p12 = pneg %p1210_p10 }
 0x189   : > { %p1217_p0 = por %p1216_p9, %p1215_p8 }
 0x18b   : > { %p1218_p6 = pnand %p1217_p0, %p1211_p12 }
 0x18d   : > { %1221 = shalt.err (!%p1218_p6)
}
 0x18e   : > { %1078 = dma.vmem_to_hbm [thread:$0]  (%p1760_p11), %s1701_s29, 128, %s1699_s5, %s809_s15  }
 0x18f PF: > { %s846_s21 = sand.u32 1, %s1256_s12   ;;  %p1761_p13 = scmp.ne.s32.totalorder %s1757_s27, 0 }
 0x190   : > { %p1762_p2 = scmp.ge.s32.totalorder %s1276_s17, 2  ;;  %s847_s24 = scalar_lea.sflag [#allocation4], %s846_s21 }
 0x192   : > { %p1085_p5 = pnand %p1762_p2, %p1761_p13 }
 0x194   : > { %1251 = dma.done.wait (!%p1085_p5), %s847_s24, 128  }
 0x195   : > { %1253 = vsyncadd (!%p1085_p5), %s847_s24, 4294967168  ;;  %s20_s17 = sadd.s32 1, %s1276_s17   ;;  %s1763_s12 = smov %s1260_s13 }
 0x196   : > { %p17_p4 = scmp.ge.s32.totalorder %s20_s17, 4   ;;  %s1764_s13 = smov %s1264_s14 }
 0x197   : > { %s1765_s14 = smov %s1358_s26  ;;  %s1766_s15 = smov %s1272_s16 }
 0x198   : > { %s1767_s16 = smov %s1769_s20  ;;  %19 = sbr.rel (!%p17_p4) target bundleno = 6 (0x6), region = 88 }
 0x19f   :  { %852 = vsyncpa [#allocation3], 1 }
 0x1a0   :  { %854 = vsyncpa [#allocation3 + $0x1], 1 }
 0x1a1   :  { %855 = vsyncpa [#allocation4], 1 }
 0x1a2   :  { %857 = vsyncpa [#allocation4 + $0x1], 1 }

</bundles_post_ra>
